<compile_context>
chip_gen: v7x
topology: tpu7x:2x2x1
jax: 0.10.0
libtpu: 0.0.40
codegen_flags: <defaults>
</compile_context>

<pallas_src>
import functools

import jax
import jax.numpy as jnp
from jax.experimental import pallas as pl
from jax.experimental.pallas import tpu as pltpu


def _cdiv(a, b):
    return -(-a // b)


def _round_up(n, m):
    return _cdiv(n, m) * m


def _crossnet_kernel_vpu(x_ref, w_ref, b_ref, o_ref, *, num_layers):
    """Lane-reduce (VPU/XLU) path.  x_ref/o_ref: (TB, D); w_ref/b_ref: (L, D)."""
    x0 = x_ref[...].astype(jnp.float32)
    out = x0
    for l in range(num_layers):                           # L small & static -> unrolled
        wl = w_ref[pl.ds(l, 1), :].astype(jnp.float32)    # (1, D)
        bl = b_ref[pl.ds(l, 1), :].astype(jnp.float32)    # (1, D)
        s = jnp.sum(out * wl, axis=-1, keepdims=True)     # (TB, 1) lane reduce
        out = out + s * x0 + bl
    o_ref[...] = out.astype(o_ref.dtype)


def _crossnet_kernel_mxu(x_ref, w_ref, b_ref, ones_ref, o_ref, *, num_layers):
    """MXU path: reduce + lane-broadcast in one matmul against a shared ones matrix."""
    x0 = x_ref[...].astype(jnp.float32)
    ones_m = ones_ref[...]                                # (D, D) of 1.0, resident
    out = x0
    for l in range(num_layers):
        wl = w_ref[pl.ds(l, 1), :].astype(jnp.float32)    # (1, D)
        bl = b_ref[pl.ds(l, 1), :].astype(jnp.float32)    # (1, D)
        # (out * w[l]) @ ones  ==  sum_d out[:, d] * w[l, d], already lane-broadcast.
        # DEFAULT precision: single MXU pass (rank-1 structure -> adequate).
        s_bcast = jnp.dot(out * wl, ones_m, preferred_element_type=jnp.float32)
        out = out + s_bcast * x0 + bl
    o_ref[...] = out.astype(o_ref.dtype)


def _tpu_vmem_and_is_v5e():
    """(physical VMEM bytes, is_v5e) with conservative fallbacks."""
    vmem_cap = 64 << 20          # conservative default = v7x per-TensorCore VMEM
    is_v5e = False
    try:
        info = pltpu.get_tpu_info()
        vmem_cap = int(getattr(info, "vmem_capacity_bytes", vmem_cap))
    except Exception:
        pass
    try:
        kind = jax.devices()[0].device_kind.lower()
        is_v5e = ("v5e" in kind) or ("v5 lite" in kind) or ("v5litepod" in kind)
    except Exception:
        pass
    return vmem_cap, is_v5e


def crossnet_forward(x, weights, biases, *, tile_b=1024, use_mxu=None):
    """x: (B, D) f32/bf16; weights, biases: (L, D).  Returns (B, D) in x.dtype."""
    B, D = x.shape
    L, Dw = weights.shape
    assert Dw == D and biases.shape == (L, D)

    # --- generation-aware VMEM budget (v5e/v6e: 128 MiB phys -> 80 MiB scoped,
    #     v7x: 64 MiB phys -> 40 MiB scoped) ---
    vmem_cap, is_v5e = _tpu_vmem_and_is_v5e()
    vmem_limit = int(min(vmem_cap * 5 // 8, 80 << 20))

    # --- MXU-path gate: only where the 2*L*D^2 FLOPs/row stay comfortably under
    #     the per-generation MXU-FLOP/HBM-byte roofline (8*D bytes/row in f32),
    #     and the (D, D) ones matrix is cheap in VMEM.  v5e's small MXU gets a
    #     much lower threshold (VPU/XLU lane-reduce path is the default there).
    if use_mxu is None:
        ratio = 200.0 if is_v5e else 500.0       # conservative MXU FLOPs per HBM byte
        use_mxu = (L * D <= 2.0 * ratio) and (2 * D * D * 4 <= vmem_limit // 4)

    # --- batch-tile budget: double-buffered I/O tiles + ~4 live f32 intermediates
    #     (x0, out, product, s) + resident params, all inside the scoped limit ---
    io_bytes = jnp.dtype(x.dtype).itemsize
    per_row = D * (2 * 2 * io_bytes + 4 * 4)
    param_bytes = 2 * (2 * L * D * 4)            # weights + biases, double-buffered
    if use_mxu:
        param_bytes += 2 * D * D * 4             # resident ones matrix
    avail = (vmem_limit * 7) // 10 - param_bytes
    budget_rows = max(8, avail // per_row)

    tb = int(min(tile_b, budget_rows, _round_up(B, 8)))
    tb = max(8, (tb // 8) * 8)

    # --- prefer >= 4 grid steps and an even count so the "parallel" batch axis
    #     keeps both v7x TensorCores balanced (best-effort; no batch padding) ---
    steps = _cdiv(B, tb)
    if steps < 4 or (steps > 1 and steps % 2 == 1):
        target = max(min(4, _cdiv(B, 8)), steps)
        if target > 1 and target % 2 == 1:
            target += 1
        tb = max(8, _round_up(_cdiv(B, target), 8))
    grid = (_cdiv(B, tb),)

    x_spec = pl.BlockSpec((tb, D), lambda i: (i, 0))
    w_spec = pl.BlockSpec((L, D), lambda i: (0, 0))
    b_spec = pl.BlockSpec((L, D), lambda i: (0, 0))
    out_spec = pl.BlockSpec((tb, D), lambda i: (i, 0))

    if use_mxu:
        ones_m = jnp.ones((D, D), dtype=jnp.float32)   # tiny one-time HBM cost
        kernel = functools.partial(_crossnet_kernel_mxu, num_layers=L)
        in_specs = [x_spec, w_spec, b_spec, pl.BlockSpec((D, D), lambda i: (0, 0))]
        args = (x, weights, biases, ones_m)
    else:
        kernel = functools.partial(_crossnet_kernel_vpu, num_layers=L)
        in_specs = [x_spec, w_spec, b_spec]
        args = (x, weights, biases)

    return pl.pallas_call(
        kernel,
        out_shape=jax.ShapeDtypeStruct((B, D), x.dtype),
        grid_spec=pltpu.PrefetchScalarGridSpec(
            num_scalar_prefetch=0,
            grid=grid,
            in_specs=in_specs,
            out_specs=out_spec,
        ),
        compiler_params=pltpu.CompilerParams(
            dimension_semantics=("parallel",),
            vmem_limit_bytes=vmem_limit,
        ),
    )(*args)


def crossnet_reference(x, weights, biases):
    x0 = x.astype(jnp.float32)
    out = x0
    for l in range(weights.shape[0]):
        s = jnp.sum(out * weights[l][None, :].astype(jnp.float32),
                    axis=-1, keepdims=True)
        out = out + s * x0 + biases[l][None, :].astype(jnp.float32)
    return out


if __name__ == "__main__":
    # Small demo shapes; exercises a non-128 feature dim (96, handled with a
    # full-extent lane block, no padding) and a ragged batch (100, handled with
    # a cdiv grid and a partial last block, no padding).
    B, D, L = 100, 96, 3

    key = jax.random.PRNGKey(0)
    kx, kw, kb = jax.random.split(key, 3)

    x = jax.random.normal(kx, (B, D), dtype=jnp.float32)

    # nn.Linear(D, 1, bias=False) init: uniform(-1/sqrt(D), 1/sqrt(D)).
    bound = 1.0 / jnp.sqrt(jnp.float32(D))
    weights = jax.random.uniform(kw, (L, D), dtype=jnp.float32,
                                 minval=-bound, maxval=bound)
    # Module initializes bias to zeros; use small nonzero values to exercise the path.
    biases = 0.1 * jax.random.normal(kb, (L, D), dtype=jnp.float32)

    ref = crossnet_reference(x, weights, biases)

    # VPU/XLU lane-reduce path (default on v5e / large D) -- pure f32 math.
    out_vpu = jax.block_until_ready(crossnet_forward(x, weights, biases, use_mxu=False))
    assert out_vpu.shape == (B, D)
    assert jnp.allclose(out_vpu, ref, atol=1e-4, rtol=1e-4), "VPU path mismatch"

    # MXU path (reduce + lane-broadcast via ones matmul, DEFAULT precision =
    # single bf16 MXU pass, hence the looser tolerance).
    out_mxu = jax.block_until_ready(crossnet_forward(x, weights, biases, use_mxu=True))
    assert out_mxu.shape == (B, D)
    assert jnp.allclose(out_mxu, ref, atol=5e-2, rtol=5e-2), "MXU path mismatch"

    # bf16 storage for x / out (halves HBM traffic; kernel accumulates in f32).
    x_bf16 = x.astype(jnp.bfloat16)
    out_bf16 = jax.block_until_ready(
        crossnet_forward(x_bf16, weights, biases, use_mxu=False))
    ref_bf16 = crossnet_reference(x_bf16.astype(jnp.float32), weights, biases)
    assert out_bf16.shape == (B, D) and out_bf16.dtype == jnp.bfloat16
    assert jnp.allclose(out_bf16.astype(jnp.float32), ref_bf16,
                        atol=3e-2, rtol=3e-2), "bf16 path mismatch"

    print("KERNEL_OK")
</pallas_src>

<mosaic_0001>
module attributes {stable_mosaic.version = 11 : i64} {
  func.func @_crossnet_kernel_vpu(%arg0: i32, %arg1: memref<32x96xf32, #tpu.memory_space<vmem>>, %arg2: memref<3x96xf32, #tpu.memory_space<vmem>>, %arg3: memref<3x96xf32, #tpu.memory_space<vmem>>, %arg4: memref<32x96xf32, #tpu.memory_space<vmem>>) attributes {dimension_semantics = [#tpu.dimension_semantics<parallel>], iteration_bounds = array<i64: 4>, scalar_prefetch = 0 : i64, scratch_operands = 0 : i64, tpu.core_type = #tpu.core_type<tc>, window_params = [{transform_indices = @transform_0, window_bounds = array<i64: 32, 96>}, {pipeline_mode = #tpu.pipeline_mode<synchronous>, transform_indices = @transform_1, window_bounds = array<i64: 3, 96>}, {pipeline_mode = #tpu.pipeline_mode<synchronous>, transform_indices = @transform_2, window_bounds = array<i64: 3, 96>}, {transform_indices = @transform_3, window_bounds = array<i64: 32, 96>}]} {
    %c0 = arith.constant 0 : index
    %c0_0 = arith.constant 0 : index
    %0 = vector.load %arg1[%c0, %c0_0] : memref<32x96xf32, #tpu.memory_space<vmem>>, vector<32x96xf32>
    %c0_1 = arith.constant 0 : index
    %c0_2 = arith.constant 0 : index
    %1 = vector.load %arg2[%c0_1, %c0_2] : memref<3x96xf32, #tpu.memory_space<vmem>>, vector<1x96xf32>
    %c0_3 = arith.constant 0 : index
    %c0_4 = arith.constant 0 : index
    %2 = vector.load %arg3[%c0_3, %c0_4] : memref<3x96xf32, #tpu.memory_space<vmem>>, vector<1x96xf32>
    %3 = vector.broadcast %1 : vector<1x96xf32> to vector<32x96xf32>
    %4 = arith.mulf %0, %3 : vector<32x96xf32>
    %cst = arith.constant dense<0.000000e+00> : vector<32xf32>
    %5 = vector.multi_reduction <add>, %4, %cst [1] : vector<32x96xf32> to vector<32xf32>
    %6 = vector.shape_cast %5 : vector<32xf32> to vector<32x1xf32>
    %7 = vector.broadcast %6 : vector<32x1xf32> to vector<32x96xf32>
    %8 = arith.mulf %7, %0 : vector<32x96xf32>
    %9 = arith.addf %0, %8 : vector<32x96xf32>
    %10 = vector.broadcast %2 : vector<1x96xf32> to vector<32x96xf32>
    %11 = arith.addf %9, %10 : vector<32x96xf32>
    %c1 = arith.constant 1 : index
    %c0_5 = arith.constant 0 : index
    %12 = vector.load %arg2[%c1, %c0_5] : memref<3x96xf32, #tpu.memory_space<vmem>>, vector<1x96xf32>
    %c1_6 = arith.constant 1 : index
    %c0_7 = arith.constant 0 : index
    %13 = vector.load %arg3[%c1_6, %c0_7] : memref<3x96xf32, #tpu.memory_space<vmem>>, vector<1x96xf32>
    %14 = vector.broadcast %12 : vector<1x96xf32> to vector<32x96xf32>
    %15 = arith.mulf %11, %14 : vector<32x96xf32>
    %cst_8 = arith.constant dense<0.000000e+00> : vector<32xf32>
    %16 = vector.multi_reduction <add>, %15, %cst_8 [1] : vector<32x96xf32> to vector<32xf32>
    %17 = vector.shape_cast %16 : vector<32xf32> to vector<32x1xf32>
    %18 = vector.broadcast %17 : vector<32x1xf32> to vector<32x96xf32>
    %19 = arith.mulf %18, %0 : vector<32x96xf32>
    %20 = arith.addf %11, %19 : vector<32x96xf32>
    %21 = vector.broadcast %13 : vector<1x96xf32> to vector<32x96xf32>
    %22 = arith.addf %20, %21 : vector<32x96xf32>
    %c2 = arith.constant 2 : index
    %c0_9 = arith.constant 0 : index
    %23 = vector.load %arg2[%c2, %c0_9] : memref<3x96xf32, #tpu.memory_space<vmem>>, vector<1x96xf32>
    %c2_10 = arith.constant 2 : index
    %c0_11 = arith.constant 0 : index
    %24 = vector.load %arg3[%c2_10, %c0_11] : memref<3x96xf32, #tpu.memory_space<vmem>>, vector<1x96xf32>
    %25 = vector.broadcast %23 : vector<1x96xf32> to vector<32x96xf32>
    %26 = arith.mulf %22, %25 : vector<32x96xf32>
    %cst_12 = arith.constant dense<0.000000e+00> : vector<32xf32>
    %27 = vector.multi_reduction <add>, %26, %cst_12 [1] : vector<32x96xf32> to vector<32xf32>
    %28 = vector.shape_cast %27 : vector<32xf32> to vector<32x1xf32>
    %29 = vector.broadcast %28 : vector<32x1xf32> to vector<32x96xf32>
    %30 = arith.mulf %29, %0 : vector<32x96xf32>
    %31 = arith.addf %22, %30 : vector<32x96xf32>
    %32 = vector.broadcast %24 : vector<1x96xf32> to vector<32x96xf32>
    %33 = arith.addf %31, %32 : vector<32x96xf32>
    %c0_13 = arith.constant 0 : index
    %c0_14 = arith.constant 0 : index
    %34 = vector.load %arg4[%c0_13, %c0_14] : memref<32x96xf32, #tpu.memory_space<vmem>>, vector<32x96xf32>
    tpu.vector_store %arg4[%c0_13, %c0_14], %33 {strides = array<i32>} : memref<32x96xf32, #tpu.memory_space<vmem>>, vector<32x96xf32>,
    return
  }
  func.func @transform_0(%arg0: i32) -> (i32, i32) {
    %c0_i32 = arith.constant 0 : i32
    %c0_i32_0 = arith.constant 0 : i32
    return %arg0, %c0_i32 : i32, i32
  }
  func.func @transform_1(%arg0: i32) -> (i32, i32) {
    %c0_i32 = arith.constant 0 : i32
    %c0_i32_0 = arith.constant 0 : i32
    %c0_i32_1 = arith.constant 0 : i32
    return %c0_i32, %c0_i32_0 : i32, i32
  }
  func.func @transform_2(%arg0: i32) -> (i32, i32) {
    %c0_i32 = arith.constant 0 : i32
    %c0_i32_0 = arith.constant 0 : i32
    %c0_i32_1 = arith.constant 0 : i32
    return %c0_i32, %c0_i32_0 : i32, i32
  }
  func.func @transform_3(%arg0: i32) -> (i32, i32) {
    %c0_i32 = arith.constant 0 : i32
    %c0_i32_0 = arith.constant 0 : i32
    return %arg0, %c0_i32 : i32, i32
  }
}

</mosaic_0001>

<bundles_post_ra>
// kernel: tpu_custom_call.1
= control target key start
LH: loop header
LB: loop body
LE: loop exit
PB: predicated region body
PF: predicated region fallthrough
CT: control target
= control target key end

     0   :  { %s771_s12 = smov 0   ;;  %s773_s13 = smov 0   ;;  %s933_s0 = inlined_call_operand.vmem [shape: f32[100,96], index: 0, kind: input, shape index: {}]   ;;  %s934_s1 = inlined_call_operand.vmem [shape: f32[3,96], index: 1, kind: input, shape index: {}]   ;;  %s935_s2 = inlined_call_operand.vmem [shape: f32[3,96], index: 2, kind: input, shape index: {}]   ;;  %s936_s3 = inlined_call_operand.vmem [shape: f32[100,96], index: 3, kind: output, shape index: {}]  }
   0x1   :  { %s775_s14 = smov 0  }
   0x2 LB: > { %s784_s15 = sadd.s32 4294967295, %s717_s14   ;;  %s786_s16 = sadd.s32 1, %s717_s14   ;;  %s717_s14 = sphi %s775_s14, %s943_s14   ;;  %s713_s13 = sphi %s773_s13, %s942_s13   ;;  %s709_s12 = sphi %s771_s12, %s941_s12  }
   0x3   : > { %s85_s17 = ssub.s32 %s717_s14, %s786_s16  ;;  %s88_s18 = sadd.s32 1, %s713_s13 }
   0x4   : > { %p86_p0 = scmp.eq.s32.totalorder %s85_s17, 0  ;;  %p98_p1 = scmp.ne.s32.totalorder %s713_s13, %s709_s12 }
   0x5   : > { %p99_p2 = scmp.eq.s32.totalorder %s784_s15, 3  ;;  %p545_p3 = scmp.ge.s32.totalorder %s717_s14, 1 }
   0x6   : > { %s794_s19 = scalar_select %p86_p0, %s713_s13, %s88_s18  }
   0x7   : > { %p796_p4 = por %p99_p2, %p98_p1  ;;  %p146_p5 = scmp.lt.s32.totalorder %s717_s14, 5 }
   0x9   : > { %p147_p6 = pnand %p545_p3, %p146_p5 }
   0xa   : > { %s801_s21 = sshll.u32 (!%p147_p6), %s784_s15, 2  ;;  %v549_v0 = vld [vmem:[%s934_s1] ss:$0 sm:$0xff] (!%p147_p6)  ;;  %vm206_vm0 = vcmask (!%p147_p6), 785408   ;;  %v551_v22 = vld [vmem:[%s934_s1 + $0x1] ss:$0 sm:$0xff] (!%p147_p6) }
   0xb   : > { %150 = sbr.rel (%p147_p6) target bundleno = 534 (0x216), region = 32  ;;  %p178_p7 = scmp.lt.s32.totalorder (!%p147_p6), %s801_s21, 12  ;;  %v550_v17 = vld [vmem:[%s935_s2] ss:$0 sm:$0xff] (!%p147_p6)  ;;  %v552_v41 = vld [vmem:[%s935_s2 + $0x1] ss:$0 sm:$0xff] (!%p147_p6) }
   0xc   : > { %v553_v45 = vld [vmem:[%s934_s1 + $0x2] ss:$0 sm:$0xff] (!%p147_p6)  ;;  %s170_s10 = sand.u32 (!%p147_p6), 1, %s709_s12  }
   0xd   : > { %s546_s11 = sshll.u32 (!%p147_p6), %s170_s10, 5 }
   0xe   : > { %s866_s18 = scalar_lea.vmem (!%p147_p6), [#allocation2], %s546_s11  }
  0x12   : > { %s179_s22 = scalar_select %p178_p7, %s801_s21, 12 }
  0x13   : > { %s323_s12 = ssub.s32 (%p796_p4), 13, %s801_s21 }
  0x14   : > { %s548_s23 = sshll.u32 %s179_s22, 3  ;;  %s572_s22 = sshll.u32 (%p796_p4), %s784_s15, 5 }
  0x15   : > { %s181_s28 = scalar_lea.vmem %s933_s0, %s548_s23  ;;  %p324_p8 = scmp.lt.s32.totalorder (%p796_p4), %s323_s12, 4 }
  0x16   : > { %v811_v1 = vld [vmem:[%s181_s28] sm:$0xff]  ;;  %v813_v2 = vld [vmem:[%s181_s28 + $0x10] sm:$0xff]  ;;  %v815_v3 = vld [vmem:[%s181_s28 + $0x8] sm:$0xff]  ;;  %s884_s25 = scalar_lea.vmem (%p796_p4), %s936_s3, %s572_s22  }
  0x17   : > { %v202_v4 = vmul.f32 %v549_v0, %v811_v1  ;;  %v204_v5 = vmul.f32 %v549_v0, %v813_v2  ;;  %v203_v6 = vmul.f32 %v549_v0, %v815_v3  ;;  %v820_v7 = vld [vmem:[%s181_s28 + $0x18] sm:$0xff] }
  0x18   : > { %v205_v8 = vmul.f32 %v549_v0, %v820_v7 }
  0x19   : > { %v207_v9 = vsel %vm206_vm0, %v202_v4, 0.0  ;;  %v213_v10 = vsel %vm206_vm0, %v204_v5, 0.0  ;;  %v210_v11 = vsel %vm206_vm0, %v203_v6, 0.0  ;;  %v554_v6 = vld [vmem:[%s935_s2 + $0x2] ss:$0 sm:$0xff] }
  0x1a   : > { %208 = vadd.xlane.f32.xlu0 %v207_v9  ;;  %214 = vadd.xlane.f32.xlu1 %v213_v10  ;;  %v216_v12 = vsel %vm206_vm0, %v205_v8, 0.0 }
  0x1e   : > { %211 = vadd.xlane.f32.xlu0 %v210_v11  ;;  %217 = vadd.xlane.f32.xlu1 %v216_v12 }
  0xa7   : > { %v209_v13 = vpop.xlane.xlu0 %208  ;;  %v215_v14 = vpop.xlane.xlu1 %214 }
  0xa8   : > { %v219_v15 = vmul.f32 %v209_v13, %v811_v1  ;;  %v221_v16 = vmul.f32 %v215_v14, %v813_v2 }
  0xaa   : > { %v223_v18 = vadd.f32 %v219_v15, %v811_v1  ;;  %v225_v19 = vadd.f32 %v221_v16, %v813_v2 }
  0xab   : > { %v212_v20 = vpop.xlane.xlu0 %211  ;;  %v218_v21 = vpop.xlane.xlu1 %217 }
  0xac   : > { %v220_v23 = vmul.f32 %v212_v20, %v815_v3  ;;  %v222_v24 = vmul.f32 %v218_v21, %v820_v7  ;;  %v231_v25 = vadd.f32 %v550_v17, %v223_v18  ;;  %v233_v26 = vadd.f32 %v550_v17, %v225_v19 }
  0xae   : > { %v224_v27 = vadd.f32 %v220_v23, %v815_v3  ;;  %v226_v28 = vadd.f32 %v222_v24, %v820_v7  ;;  %v241_v29 = vmul.f32 %v551_v22, %v231_v25  ;;  %v243_v30 = vmul.f32 %v551_v22, %v233_v26 }
  0xb0   : > { %v245_v31 = vsel %vm206_vm0, %v241_v29, 0.0  ;;  %v232_v32 = vadd.f32 %v550_v17, %v224_v27  ;;  %v234_v33 = vadd.f32 %v550_v17, %v226_v28  ;;  %v251_v34 = vsel %vm206_vm0, %v243_v30, 0.0 }
  0xb1   : > { %246 = vadd.xlane.f32.xlu0 %v245_v31 }
  0xb2   : > { %v242_v35 = vmul.f32 %v551_v22, %v232_v32  ;;  %v244_v36 = vmul.f32 %v551_v22, %v234_v33 }
  0xb4   : > { %v248_v37 = vsel %vm206_vm0, %v242_v35, 0.0  ;;  %v254_v38 = vsel %vm206_vm0, %v244_v36, 0.0 }
  0xb5   : > { %252 = vadd.xlane.f32.xlu0 %v251_v34  ;;  %249 = vadd.xlane.f32.xlu1 %v248_v37 }
  0xb9   : > { %255 = vadd.xlane.f32.xlu1 %v254_v38 }
 0x13e   : > { %v247_v39 = vpop.xlane.xlu0 %246 }
 0x13f   : > { %v257_v40 = vmul.f32 %v247_v39, %v811_v1 }
 0x141   : > { %v261_v42 = vadd.f32 %v257_v40, %v231_v25 }
 0x142   : > { %v250_v43 = vpop.xlane.xlu1 %249  ;;  %v253_v44 = vpop.xlane.xlu0 %252 }
 0x143   : > { %v258_v46 = vmul.f32 %v250_v43, %v815_v3  ;;  %v259_v47 = vmul.f32 %v253_v44, %v813_v2  ;;  %v269_v48 = vadd.f32 %v552_v41, %v261_v42 }
 0x145   : > { %v262_v49 = vadd.f32 %v258_v46, %v232_v32  ;;  %v263_v50 = vadd.f32 %v259_v47, %v233_v26  ;;  %v279_v51 = vmul.f32 %v553_v45, %v269_v48 }
 0x146   : > { %v256_v52 = vpop.xlane.xlu1 %255 }
 0x147   : > { %v260_v53 = vmul.f32 %v256_v52, %v820_v7  ;;  %v283_v54 = vsel %vm206_vm0, %v279_v51, 0.0  ;;  %v270_v55 = vadd.f32 %v552_v41, %v262_v49  ;;  %v271_v56 = vadd.f32 %v552_v41, %v263_v50 }
 0x148   : > { %284 = vadd.xlane.f32.xlu0 %v283_v54 }
 0x149   : > { %v264_v57 = vadd.f32 %v260_v53, %v234_v33  ;;  %v280_v58 = vmul.f32 %v553_v45, %v270_v55  ;;  %v281_v59 = vmul.f32 %v553_v45, %v271_v56 }
 0x14b   : > { %v286_v60 = vsel %vm206_vm0, %v280_v58, 0.0  ;;  %v289_v61 = vsel %vm206_vm0, %v281_v59, 0.0  ;;  %v272_v62 = vadd.f32 %v552_v41, %v264_v57 }
 0x14c   : > { %287 = vadd.xlane.f32.xlu1 %v286_v60  ;;  %290 = vadd.xlane.f32.xlu0 %v289_v61 }
 0x14d   : > { %v282_v63 = vmul.f32 %v553_v45, %v272_v62 }
 0x14f   : > { %v292_v0 = vsel %vm206_vm0, %v282_v63, 0.0 }
 0x150   : > { %293 = vadd.xlane.f32.xlu1 %v292_v0 }
 0x1d5   : > { %v285_v4 = vpop.xlane.xlu0 %284 }
 0x1d6   : > { %v295_v5 = vmul.f32 %v285_v4, %v811_v1 }
 0x1d8   : > { %v299_v8 = vadd.f32 %v295_v5, %v269_v48 }
 0x1d9   : > { %v288_v9 = vpop.xlane.xlu1 %287  ;;  %v291_v10 = vpop.xlane.xlu0 %290 }
 0x1da   : > { %v307_v11 = vadd.f32 %v554_v6, %v299_v8  ;;  %v296_v12 = vmul.f32 %v288_v9, %v815_v3  ;;  %v297_v13 = vmul.f32 %v291_v10, %v813_v2 }
 0x1dc   : > { %311 = vst.msk [vmem:[%s866_s18] sm:$0xff] %vm206_vm0, %v307_v11  ;;  %v300_v1 = vadd.f32 %v296_v12, %v270_v55  ;;  %v301_v14 = vadd.f32 %v297_v13, %v271_v56 }
 0x1dd   : > { %v294_v15 = vpop.xlane.xlu1 %293 }
 0x1de   : > { %v308_v16 = vadd.f32 %v554_v6, %v300_v1  ;;  %v309_v17 = vadd.f32 %v554_v6, %v301_v14  ;;  %v298_v18 = vmul.f32 %v294_v15, %v820_v7  ;;  %321 = sbr.rel (!%p796_p4) target bundleno = 534 (0x216), region = 36 }
 0x1e0   : > { %312 = vst.msk [vmem:[%s866_s18 + $0x8] sm:$0xff] %vm206_vm0, %v308_v16  ;;  %313 = vst.msk [vmem:[%s866_s18 + $0x10] sm:$0xff] %vm206_vm0, %v309_v17  ;;  %v302_v2 = vadd.f32 %v298_v18, %v272_v62 }
 0x1e2   : > { %v310_v3 = vadd.f32 %v554_v6, %v302_v2 }
 0x1e4   : > { %314 = vst.msk [vmem:[%s866_s18 + $0x18] sm:$0xff] %vm206_vm0, %v310_v3 }
 0x1e5   : > { %s945_s12 = smov (!%p324_p8, %s323_s12), 4 }
 0x1e6   : > { %s557_s26 = sshll.u32 %s945_s12, 7 }
 0x1e7   : > { %p560_p9 = scmp.eq.s32.totalorder %s557_s26, 0 }
 0x1e8   : > { %s890_s27 = sshrl.u32 (!%p560_p9), %s945_s12, 2 }
 0x1e9   : > { %332 = sbr.rel (%p560_p9) target bundleno = 534 (0x216), region = 40  ;;  %p561_p10 = scmp.le.s32.totalorder (!%p560_p9), %s890_s27, 0 }
 0x1f0   : > { %498 = sbr.rel (%p561_p10) target bundleno = 513 (0x201), region = 116  ;;  %s938_s15 = smov (!%p561_p10), %s884_s25 }
 0x1f1   : > { %s939_s20 = smov (!%p561_p10), %s866_s18  ;;  %s899_s21 = smov (!%p561_p10), 0  }
 0x1f2   : > { %s731_s28 = smov (!%p561_p10), 0  }
 0x1f7 LB: >> { %v400_v7 = vld [vmem:[%s725_s20] sm:$0xff]  ;;  %v402_v19 = vld [vmem:[%s725_s20 + $0x8] sm:$0xff]  ;;  %v404_v20 = vld [vmem:[%s725_s20 + $0x10] sm:$0xff]  ;;  %s408_s29 = sadd.s32 1, %s729_s21  ;;  %s394_s28 = sadd.s32 1, %s733_s28   ;;  %s733_s28 = sphi %s731_s28, %s394_s28   ;;  %s729_s21 = sphi %s899_s21, %s940_s21   ;;  %s725_s20 = sphi %s939_s20, %s413_s20   ;;  %s721_s15 = sphi %s938_s15, %s414_s15  }
 0x1f8   : >> { %401 = vst [vmem:[%s721_s15] sm:$0xff] %v400_v7  ;;  %403 = vst [vmem:[%s721_s15 + $0x8] sm:$0xff] %v402_v19  ;;  %v406_v21 = vld [vmem:[%s725_s20 + $0x18] sm:$0xff]  ;;  %p409_p11 = scmp.ge.s32.totalorder %s408_s29, %s890_s27  ;;  %p393_p12 = scmp.ge.s32.totalorder %s394_s28, %s890_s27 }
 0x1f9   : >> { %405 = vst [vmem:[%s721_s15 + $0x10] sm:$0xff] %v404_v20  ;;  %407 = vst [vmem:[%s721_s15 + $0x18] sm:$0xff] %v406_v21 }
 0x1fa   : >> { %s947_s29 = smov (%p409_p11, %s408_s29), 0  ;;  %396 = sbr.rel (!%p393_p12) target bundleno = 503 (0x1f7), region = 122 }
 0x1fb   : >> { %s562_s30 = sshll.u32 %s947_s29, 5  ;;  %s940_s21 = smov %s947_s29 }
 0x1fc   : >> { %s413_s20 = scalar_lea.vmem %s866_s18, %s562_s30 [#allocation2]   ;;  %s414_s15 = scalar_lea.vmem %s884_s25, %s562_s30  }
 0x201 PF: > { %s915_s4 = sand.u32 3, %s945_s12   ;;  %s573_s5 = sshll.u32 %s890_s27, 5 }
 0x202   : > { %s419_s6 = scalar_lea.vmem %s866_s18, %s573_s5 [#allocation2]   ;;  %s421_s7 = scalar_lea.vmem %s884_s25, %s573_s5  }
 0x203   : > { %p567_p13 = scmp.le.s32.totalorder %s915_s4, 0 }
 0x204   : > { %s735_s8 = smov (!%p567_p13), %s421_s7   ;;  %s739_s9 = smov (!%p567_p13), %s419_s6  }
 0x205   : > { %512 = sbr.rel (%p567_p13) target bundleno = 534 (0x216), region = 127  ;;  %s743_s10 = smov (!%p567_p13), 0  }
 0x206   : > { %s747_s11 = smov (!%p567_p13), 0  }
 0x20c LB: >> { %v431_v22 = vld [vmem:[%s741_s9] sm:$0xff]  ;;  %s433_s14 = sadd.s32 1, %s745_s10  ;;  %s425_s11 = sadd.s32 1, %s749_s11   ;;  %s749_s11 = sphi %s747_s11, %s425_s11   ;;  %s745_s10 = sphi %s743_s10, %s744_s10   ;;  %s741_s9 = sphi %s739_s9, %s438_s9   ;;  %s737_s8 = sphi %s735_s8, %s439_s8  }
 0x20d   : >> { %432 = vst [vmem:[%s737_s8] sm:$0xff] %v431_v22  ;;  %p434_p0 = scmp.ge.s32.totalorder %s433_s14, %s915_s4  ;;  %p424_p1 = scmp.ge.s32.totalorder %s425_s11, %s915_s4 }
 0x20f   : >> { %s949_s14 = smov (%p434_p0, %s433_s14), 0  ;;  %427 = sbr.rel (!%p424_p1) target bundleno = 524 (0x20c), region = 133 }
 0x210   : >> { %s568_s17 = sshll.u32 %s949_s14, 3  ;;  %s744_s10 = smov %s949_s14  }
 0x211   : >> { %s438_s9 = scalar_lea.vmem %s419_s6, %s568_s17 [#allocation2]   ;;  %s439_s8 = scalar_lea.vmem %s421_s7, %s568_s17  }
 0x216 PF: > { %p10_p2 = scmp.ge.s32.totalorder %s786_s16, 6   ;;  %s941_s12 = smov %s713_s13 }
 0x217   : > { %s942_s13 = smov %s794_s19  ;;  %s943_s14 = smov %s786_s16 }
 0x218   :  { %12 = sbr.rel (!%p10_p2) target bundleno = 2 (0x2), region = 144 }

</bundles_post_ra>
